<compile_context>
chip_gen: v5e
topology: v5e:2x2
jax: 0.10.0
libtpu: 0.0.40
codegen_flags: <defaults>
</compile_context>

<pallas_src>
import jax
import jax.numpy as jnp
from jax.experimental import pallas as pl
from jax.experimental.pallas import tpu as pltpu

INPUT_SIZE = 210
H1 = 128
H2 = 64
BN_EPS = 1e-5


def team_ffn_kernel(x_ref, w1_ref, c1_ref, w2_ref, c2_ref, o_ref):
    # Linear1 (+ folded BN1) + ReLU.  MXU matmul accumulates in f32.
    h = jnp.dot(x_ref[...], w1_ref[...], preferred_element_type=jnp.float32)
    h = jnp.maximum(h + c1_ref[...], 0.0)                        # (tb, 128) f32

    # Dropout(0.3): identity in eval mode.
    # TODO(synk): training-mode dropout (stochastic mask via pltpu.prng_*) not emitted.

    # Linear2 (+ folded BN2) + ReLU.  Keep h in f32 and up-cast the tiny
    # (128, 64) weight tile instead (no-op when weights are already f32).
    z = jnp.dot(h, w2_ref[...].astype(jnp.float32),
                preferred_element_type=jnp.float32)
    o_ref[...] = jnp.maximum(z + c2_ref[...], 0.0).astype(o_ref.dtype)


def _num_grid_targets():
    """Target grid-step count: 2 on v7x (two TensorCores share the grid via
    dimension_semantics=('parallel',)); 1 on single-TC parts (v5e/v6e)."""
    try:
        kind = jax.devices()[0].device_kind.lower()
    except Exception:
        return 1
    return 2 if "v7" in kind else 1


def _pick_tb(B, n_steps, tb_cap):
    """Largest tile giving ~n_steps grid steps, multiple of 8, capped for VMEM."""
    tb = pl.cdiv(B, max(1, n_steps))
    tb = min(tb, tb_cap)
    if tb >= B:
        return B                       # full-batch block: (8,128) rule satisfied
    tb = max(8, ((tb + 7) // 8) * 8)   # round UP so the step count stays at target
    return min(tb, B)


def team_ffn(x, fused_params, *, tb=None, tb_cap=4096, out_dtype=jnp.float32):
    """x: (B, 210), f32 or bf16 (pass bf16 only if it already lives in HBM as
    bf16 — do not cast here).  fused_params: (w1f, c1, w2f, c2) from fold_params()."""
    B, F = x.shape
    assert F == INPUT_SIZE
    w1, c1, w2, c2 = fused_params
    c1 = c1.astype(jnp.float32)
    c2 = c2.astype(jnp.float32)

    if tb is None:
        tb = _pick_tb(B, _num_grid_targets(), tb_cap)
    else:
        tb = min(tb, B)
        if tb < B:
            tb = max(8, (tb // 8) * 8)

    grid = (pl.cdiv(B, tb),)

    flops = 2 * B * (F * H1 + H1 * H2)
    bytes_accessed = int(
        B * F * x.dtype.itemsize
        + B * H2 * jnp.dtype(out_dtype).itemsize
        + w1.size * w1.dtype.itemsize + w2.size * w2.dtype.itemsize
        + (c1.size + c2.size) * 4)
    cost = pl.CostEstimate(flops=flops, transcendentals=0,
                           bytes_accessed=bytes_accessed)

    def batch_map(i):
        return (i, 0)

    def full_map(i):
        return (0, 0)

    return pl.pallas_call(
        team_ffn_kernel,
        out_shape=jax.ShapeDtypeStruct((B, H2), out_dtype),
        grid_spec=pltpu.PrefetchScalarGridSpec(
            num_scalar_prefetch=0,
            grid=grid,
            in_specs=[
                pl.BlockSpec((tb, F), batch_map),     # x tile
                pl.BlockSpec((F, H1), full_map),      # w1 * s1  (resident across grid)
                pl.BlockSpec((1, H1), full_map),      # c1 = t1 + b1*s1
                pl.BlockSpec((H1, H2), full_map),     # w2 * s2  (resident across grid)
                pl.BlockSpec((1, H2), full_map),      # c2 = t2 + b2*s2
            ],
            out_specs=pl.BlockSpec((tb, H2), batch_map),
        ),
        compiler_params=pltpu.CompilerParams(
            dimension_semantics=("parallel",),
            vmem_limit_bytes=32 << 20,   # headroom over v5e's 16 MiB default scope
        ),
        cost_estimate=cost,
    )(x, w1, c1, w2, c2)


def init_raw_params(key):
    """Deterministic synthetic parameters matching the PyTorch module shapes."""
    ks = jax.random.split(key, 10)

    # Linear1: PyTorch weight is (128, 210); stored transposed (210, 128).
    w1 = jax.random.normal(ks[0], (INPUT_SIZE, H1), jnp.float32) * 0.05
    b1 = jax.random.normal(ks[1], (1, H1), jnp.float32) * 0.05
    # BatchNorm1d(128): gamma, beta, running_mean, running_var
    g1 = 1.0 + 0.1 * jax.random.normal(ks[2], (1, H1), jnp.float32)
    be1 = 0.1 * jax.random.normal(ks[3], (1, H1), jnp.float32)
    rm1 = 0.1 * jax.random.normal(ks[4], (1, H1), jnp.float32)
    rv1 = 1.0 + 0.1 * jax.random.uniform(ks[5], (1, H1), jnp.float32)

    # Linear2: PyTorch weight is (64, 128); stored transposed (128, 64).
    w2 = jax.random.normal(ks[6], (H1, H2), jnp.float32) * 0.05
    b2 = jax.random.normal(ks[7], (1, H2), jnp.float32) * 0.05
    g2 = 1.0 + 0.1 * jax.random.normal(ks[8], (1, H2), jnp.float32)
    be2 = 0.1 * jax.random.normal(ks[9], (1, H2), jnp.float32)
    rm2 = jnp.zeros((1, H2), jnp.float32)
    rv2 = jnp.ones((1, H2), jnp.float32)

    return (w1, b1, g1, be1, rm1, rv1, w2, b2, g2, be2, rm2, rv2)


def fold_params(raw, *, weights_dtype=jnp.float32):
    """Fold Linear bias + BatchNorm (eval) into a single weight + shift per layer.

    BN(x@W + b) = (x@W + b)*s + t = x@(W*s) + (b*s + t),
    where s = gamma/sqrt(var+eps), t = beta - mean*s.

    weights_dtype lets callers store the (tiny) weight matrices in bf16 once,
    hoisting the cast out of every forward call.  Shifts c1/c2 stay f32.
    """
    (w1, b1, g1, be1, rm1, rv1, w2, b2, g2, be2, rm2, rv2) = raw
    s1 = g1 / jnp.sqrt(rv1 + BN_EPS)
    t1 = be1 - rm1 * s1
    s2 = g2 / jnp.sqrt(rv2 + BN_EPS)
    t2 = be2 - rm2 * s2
    w1f = (w1 * s1).astype(weights_dtype)    # (210, 128) * (1, 128)
    c1 = (t1 + b1 * s1).astype(jnp.float32)  # (1, 128)
    w2f = (w2 * s2).astype(weights_dtype)    # (128, 64) * (1, 64)
    c2 = (t2 + b2 * s2).astype(jnp.float32)  # (1, 64)
    return (w1f, c1, w2f, c2)


def team_ffn_ref(x, raw):
    """Pure-JAX reference with explicit Linear + BatchNorm(eval) + ReLU."""
    (w1, b1, g1, be1, rm1, rv1, w2, b2, g2, be2, rm2, rv2) = raw
    h = x @ w1 + b1
    h = (h - rm1) / jnp.sqrt(rv1 + BN_EPS) * g1 + be1
    h = jnp.maximum(h, 0.0)
    z = h @ w2 + b2
    z = (z - rm2) / jnp.sqrt(rv2 + BN_EPS) * g2 + be2
    return jnp.maximum(z, 0.0)


if __name__ == "__main__":
    key = jax.random.PRNGKey(0)
    kx, kp = jax.random.split(key)

    B = 64  # small demo batch; tb selection gives 1 grid step (2 on v7x)
    x = jax.random.normal(kx, (B, INPUT_SIZE), jnp.float32)
    raw = init_raw_params(kp)
    ref = team_ffn_ref(x, raw)

    # f32 path: tight tolerance vs reference.
    fused = fold_params(raw)
    out = jax.block_until_ready(team_ffn(x, fused))
    assert out.shape == (B, H2)
    assert jnp.allclose(out, ref, atol=1e-4, rtol=1e-4), "f32 mismatch vs reference"

    # bf16 path: x assumed to arrive in bf16 from its producer (the cast below
    # only builds the test input), weights stored bf16 once in fold_params,
    # h kept f32 in-kernel, bf16 output.  Loose tolerance.
    x_bf16 = x.astype(jnp.bfloat16)
    fused_bf16 = fold_params(raw, weights_dtype=jnp.bfloat16)
    out_bf16 = jax.block_until_ready(
        team_ffn(x_bf16, fused_bf16, out_dtype=jnp.bfloat16))
    assert out_bf16.shape == (B, H2)
    assert jnp.allclose(out_bf16.astype(jnp.float32), ref, atol=1e-1, rtol=1e-1), \
        "bf16 mismatch vs reference"

    print("KERNEL_OK")
</pallas_src>

<mosaic_0001>
module attributes {stable_mosaic.version = 11 : i64} {
  func.func @team_ffn_kernel(%arg0: i32, %arg1: memref<64x210xf32, #tpu.memory_space<vmem>>, %arg2: memref<210x128xf32, #tpu.memory_space<vmem>>, %arg3: memref<1x128xf32, #tpu.memory_space<vmem>>, %arg4: memref<128x64xf32, #tpu.memory_space<vmem>>, %arg5: memref<1x64xf32, #tpu.memory_space<vmem>>, %arg6: memref<64x64xf32, #tpu.memory_space<vmem>>) attributes {dimension_semantics = [#tpu.dimension_semantics<parallel>], iteration_bounds = array<i64: 1>, scalar_prefetch = 0 : i64, scratch_operands = 0 : i64, tpu.core_type = #tpu.core_type<tc>, window_params = [{transform_indices = @transform_0, window_bounds = array<i64: 64, 210>}, {pipeline_mode = #tpu.pipeline_mode<synchronous>, transform_indices = @transform_1, window_bounds = array<i64: 210, 128>}, {pipeline_mode = #tpu.pipeline_mode<synchronous>, transform_indices = @transform_2, window_bounds = array<i64: 1, 128>}, {pipeline_mode = #tpu.pipeline_mode<synchronous>, transform_indices = @transform_3, window_bounds = array<i64: 128, 64>}, {pipeline_mode = #tpu.pipeline_mode<synchronous>, transform_indices = @transform_4, window_bounds = array<i64: 1, 64>}, {transform_indices = @transform_5, window_bounds = array<i64: 64, 64>}]} {
    %c0 = arith.constant 0 : index
    %c0_0 = arith.constant 0 : index
    %0 = vector.load %arg1[%c0, %c0_0] : memref<64x210xf32, #tpu.memory_space<vmem>>, vector<64x210xf32>
    %c0_1 = arith.constant 0 : index
    %c0_2 = arith.constant 0 : index
    %1 = vector.load %arg2[%c0_1, %c0_2] : memref<210x128xf32, #tpu.memory_space<vmem>>, vector<210x128xf32>
    %cst = arith.constant dense<0.000000e+00> : vector<64x128xf32>
    %2 = tpu.matmul %0, %1, %cst {dimension_numbers = #tpu.dot_dimension_numbers<[1], [0], [0], [1], [0, 0, 1, 1], [], []>} : vector<64x210xf32>, vector<210x128xf32>, vector<64x128xf32> -> vector<64x128xf32>
    %c0_3 = arith.constant 0 : index
    %c0_4 = arith.constant 0 : index
    %3 = vector.load %arg3[%c0_3, %c0_4] : memref<1x128xf32, #tpu.memory_space<vmem>>, vector<1x128xf32>
    %4 = vector.broadcast %3 : vector<1x128xf32> to vector<64x128xf32>
    %5 = arith.addf %2, %4 : vector<64x128xf32>
    %cst_5 = arith.constant 0.000000e+00 : f32
    %6 = vector.broadcast %cst_5 : f32 to vector<64x128xf32>
    %7 = arith.maximumf %5, %6 : vector<64x128xf32>
    %c0_6 = arith.constant 0 : index
    %c0_7 = arith.constant 0 : index
    %8 = vector.load %arg4[%c0_6, %c0_7] : memref<128x64xf32, #tpu.memory_space<vmem>>, vector<128x64xf32>
    %cst_8 = arith.constant dense<0.000000e+00> : vector<64x64xf32>
    %9 = tpu.matmul %7, %8, %cst_8 {dimension_numbers = #tpu.dot_dimension_numbers<[1], [0], [0], [1], [0, 0, 1, 1], [], []>} : vector<64x128xf32>, vector<128x64xf32>, vector<64x64xf32> -> vector<64x64xf32>
    %c0_9 = arith.constant 0 : index
    %c0_10 = arith.constant 0 : index
    %10 = vector.load %arg5[%c0_9, %c0_10] : memref<1x64xf32, #tpu.memory_space<vmem>>, vector<1x64xf32>
    %11 = vector.broadcast %10 : vector<1x64xf32> to vector<64x64xf32>
    %12 = arith.addf %9, %11 : vector<64x64xf32>
    %cst_11 = arith.constant 0.000000e+00 : f32
    %13 = vector.broadcast %cst_11 : f32 to vector<64x64xf32>
    %14 = arith.maximumf %12, %13 : vector<64x64xf32>
    %c0_12 = arith.constant 0 : index
    %c0_13 = arith.constant 0 : index
    %15 = vector.load %arg6[%c0_12, %c0_13] : memref<64x64xf32, #tpu.memory_space<vmem>>, vector<64x64xf32>
    tpu.vector_store %arg6[%c0_12, %c0_13], %14 {strides = array<i32>} : memref<64x64xf32, #tpu.memory_space<vmem>>, vector<64x64xf32>,
    return
  }
  func.func @transform_0(%arg0: i32) -> (i32, i32) {
    %c0_i32 = arith.constant 0 : i32
    %c0_i32_0 = arith.constant 0 : i32
    return %arg0, %c0_i32 : i32, i32
  }
  func.func @transform_1(%arg0: i32) -> (i32, i32) {
    %c0_i32 = arith.constant 0 : i32
    %c0_i32_0 = arith.constant 0 : i32
    %c0_i32_1 = arith.constant 0 : i32
    return %c0_i32, %c0_i32_0 : i32, i32
  }
  func.func @transform_2(%arg0: i32) -> (i32, i32) {
    %c0_i32 = arith.constant 0 : i32
    %c0_i32_0 = arith.constant 0 : i32
    %c0_i32_1 = arith.constant 0 : i32
    return %c0_i32, %c0_i32_0 : i32, i32
  }
  func.func @transform_3(%arg0: i32) -> (i32, i32) {
    %c0_i32 = arith.constant 0 : i32
    %c0_i32_0 = arith.constant 0 : i32
    %c0_i32_1 = arith.constant 0 : i32
    return %c0_i32, %c0_i32_0 : i32, i32
  }
  func.func @transform_4(%arg0: i32) -> (i32, i32) {
    %c0_i32 = arith.constant 0 : i32
    %c0_i32_0 = arith.constant 0 : i32
    %c0_i32_1 = arith.constant 0 : i32
    return %c0_i32, %c0_i32_0 : i32, i32
  }
  func.func @transform_5(%arg0: i32) -> (i32, i32) {
    %c0_i32 = arith.constant 0 : i32
    %c0_i32_0 = arith.constant 0 : i32
    return %arg0, %c0_i32 : i32, i32
  }
}

</mosaic_0001>

<bundles_post_ra>
// kernel: tpu_custom_call.1
= control target key start
LH: loop header
LB: loop body
LE: loop exit
PB: predicated region body
PF: predicated region fallthrough
CT: control target
= control target key end

     0   :  { %10 = vsyncpa [#allocation3], 0  ;;  %s563_s0 = inlined_call_operand.vmem [shape: f32[64,210], index: 0, kind: input, shape index: {}]   ;;  %s564_s1 = inlined_call_operand.hbm [shape: f32[210,128], index: 1, kind: input, shape index: {}]   ;;  %s565_s2 = inlined_call_operand.vmem [shape: f32[1,128], index: 2, kind: input, shape index: {}]   ;;  %s566_s3 = inlined_call_operand.vmem [shape: f32[128,64], index: 3, kind: input, shape index: {}]   ;;  %s567_s4 = inlined_call_operand.vmem [shape: f32[1,64], index: 4, kind: input, shape index: {}]   ;;  %s568_s5 = inlined_call_operand.hbm [shape: f32[64,64], index: 5, kind: output, shape index: {}]  }
   0x1   :  { %11 = vsyncpa [#allocation4], 0  ;;  %s18_s20 = sshll.u32 %s564_s1, 4  ;;  %s399_s21 = smov [#allocation2]   ;;  %s19_s20 = int_to_ptr.hbm [resolvable:$true] %s18_s20 }
   0x2   :  { %s20_s22 = sshll.u32 %s399_s21, 4  ;;  %s400_s23 = smov 128   ;;  %s21_s22 = int_to_ptr.vmem [resolvable:$true] %s20_s22 }
   0x3   :  { %s401_s24 = smov 8  }
   0x4   :  { %26 = dma.hbm_to_vmem [thread:$0]  %s19_s20, 3456, %s21_s22, [#allocation3], %s400_s23, %s400_s23, %s401_s24  }
   0x5   :  { %395 = dma.done.wait [#allocation3], 3456  }
   0x6   :  { %396 = vsyncadd [#allocation3], 4294963840  ;;  %vm109_vm0 = vcmask 1041408   ;;  %v68_v0 = vld [vmem:[#allocation2 + $0x78] sm:$0xff]  ;;  %v67_v1 = vld [vmem:[#allocation2 + $0x70] sm:$0xff]  ;;  %vm84_vm1 = vcmask 670720  }
   0x7   :  { %113 = vmatpush.msra.mxu0 %v68_v0  ;;  %v79_v2 = vld [vmem:[#allocation2 + $0xd0] sm:$0x3]  ;;  %v78_v3 = vld [vmem:[#allocation2 + $0xc8] sm:$0xff]  ;;  %309 = vmatpush.msra.mxu3 %v68_v0  ;;  %v77_v5 = vld [vmem:[#allocation2 + $0xc0] sm:$0xff]  ;;  %vm272_vm2 = vcmask 523264   ;;  %s287_s19 = sshll.u32 %s568_s5, 4  ;;  %s288_s19 = int_to_ptr.hbm [resolvable:$true] %s287_s19 }
   0x8   :  { %v66_v4 = vld [vmem:[#allocation2 + $0x68] sm:$0xff]  ;;  %300 = vmatpush.msk.msra.mxu1 %vm109_vm0, %v79_v2  ;;  %v65_v6 = vld [vmem:[#allocation2 + $0x60] sm:$0xff]  ;;  %v76_v7 = vld [vmem:[#allocation2 + $0xb8] sm:$0xff] }
   0x9   :  { %114 = vmatpush.msra.mxu0 %v67_v1  ;;  %310 = vmatpush.msra.mxu3 %v67_v1  ;;  %v64_v8 = vld [vmem:[#allocation2 + $0x58] sm:$0xff]  ;;  %v75_v9 = vld [vmem:[#allocation2 + $0xb0] sm:$0xff]  ;;  %v74_v11 = vld [vmem:[#allocation2 + $0xa8] sm:$0xff] }
   0xa   :  { %160 = vmatpush.msra.mxu1 %v78_v3  ;;  %v63_v10 = vld [vmem:[#allocation2 + $0x50] sm:$0xff]  ;;  %v62_v12 = vld [vmem:[#allocation2 + $0x48] sm:$0xff]  ;;  %v73_v13 = vld [vmem:[#allocation2 + $0xa0] sm:$0xff] }
   0xb   :  { %115 = vmatpush.msra.mxu0 %v66_v4  ;;  %311 = vmatpush.msra.mxu3 %v66_v4  ;;  %v61_v14 = vld [vmem:[#allocation2 + $0x40] sm:$0xff]  ;;  %v72_v15 = vld [vmem:[#allocation2 + $0x98] sm:$0xff]  ;;  %v71_v17 = vld [vmem:[#allocation2 + $0x90] sm:$0xff] }
   0xc   :  { %161 = vmatpush.msra.mxu1 %v77_v5  ;;  %v60_v16 = vld [vmem:[#allocation2 + $0x38] sm:$0xff]  ;;  %v59_v18 = vld [vmem:[#allocation2 + $0x30] sm:$0xff]  ;;  %v70_v19 = vld [vmem:[#allocation2 + $0x88] sm:$0xff] }
   0xd   :  { %116 = vmatpush.msra.mxu0 %v65_v6  ;;  %312 = vmatpush.msra.mxu3 %v65_v6  ;;  %v58_v20 = vld [vmem:[#allocation2 + $0x28] sm:$0xff]  ;;  %v69_v21 = vld [vmem:[#allocation2 + $0x80] sm:$0xff]  ;;  %v56_v24 = vld [vmem:[#allocation2 + $0x18] sm:$0xff] }
   0xe   :  { %162 = vmatpush.msra.mxu1 %v76_v7  ;;  %v57_v22 = vld [vmem:[#allocation2 + $0x20] sm:$0xff]  ;;  %v38_v23 = vld [vmem:[%s563_s0 + $0x8] sm:$0xff]  ;;  %v55_v25 = vld [vmem:[#allocation2 + $0x10] sm:$0xff] }
   0xf   :  { %117 = vmatpush.msra.mxu0 %v64_v8  ;;  %313 = vmatpush.msra.mxu3 %v64_v8  ;;  %v54_v26 = vld [vmem:[#allocation2 + $0x8] sm:$0xff]  ;;  %v53_v27 = vld [vmem:[#allocation2] sm:$0xff]  ;;  %v40_v28 = vld [vmem:[%s563_s0 + $0x18] sm:$0xff] }
  0x10   :  { %163 = vmatpush.msra.mxu1 %v75_v9  ;;  %v37_v29 = vld [vmem:[%s563_s0] sm:$0xff]  ;;  %v42_v31 = vld [vmem:[%s563_s0 + $0x28] sm:$0xff]  ;;  %v39_v32 = vld [vmem:[%s563_s0 + $0x10] sm:$0xff] }
  0x11   :  { %118 = vmatpush.msra.mxu0 %v63_v10  ;;  %314 = vmatpush.msra.mxu3 %v63_v10  ;;  %v49_v30 = vld [vmem:[%s563_s0 + $0x60] sm:$0xff]  ;;  %v51_v33 = vld [vmem:[%s563_s0 + $0x70] sm:$0xff]  ;;  %v44_v34 = vld [vmem:[%s563_s0 + $0x38] sm:$0xff] }
  0x12   :  { %164 = vmatpush.msra.mxu1 %v74_v11  ;;  %v41_v35 = vld [vmem:[%s563_s0 + $0x20] sm:$0xff]  ;;  %v218_v36 = vld [vmem:[%s566_s3 + $0x78] sm:$0xff]  ;;  %v217_v37 = vld [vmem:[%s566_s3 + $0x70] sm:$0xff] }
  0x13   :  { %119 = vmatpush.msra.mxu0 %v62_v12  ;;  %315 = vmatpush.msra.mxu3 %v62_v12  ;;  %v216_v38 = vld [vmem:[%s566_s3 + $0x68] sm:$0xff]  ;;  %v215_v39 = vld [vmem:[%s566_s3 + $0x60] sm:$0xff]  ;;  %v43_v41 = vld [vmem:[%s563_s0 + $0x30] sm:$0xff] }
  0x14   :  { %165 = vmatpush.msra.mxu1 %v73_v13  ;;  %223 = vmatpush.msra.mxu2 %v218_v36  ;;  %v46_v40 = vld [vmem:[%s563_s0 + $0x48] sm:$0xff]  ;;  %v214_v42 = vld [vmem:[%s566_s3 + $0x58] sm:$0xff]  ;;  %v213_v43 = vld [vmem:[%s566_s3 + $0x50] sm:$0xff] }
  0x15   :  { %120 = vmatpush.msra.mxu0 %v61_v14  ;;  %316 = vmatpush.msra.mxu3 %v61_v14  ;;  %v212_v44 = vld [vmem:[%s566_s3 + $0x48] sm:$0xff]  ;;  %v211_v45 = vld [vmem:[%s566_s3 + $0x40] sm:$0xff]  ;;  %v48_v46 = vld [vmem:[%s563_s0 + $0x58] sm:$0xff] }
  0x16   :  { %166 = vmatpush.msra.mxu1 %v72_v15  ;;  %224 = vmatpush.msra.mxu2 %v217_v37  ;;  %v45_v47 = vld [vmem:[%s563_s0 + $0x40] sm:$0xff]  ;;  %v210_v48 = vld [vmem:[%s566_s3 + $0x38] sm:$0xff]  ;;  %v50_v49 = vld [vmem:[%s563_s0 + $0x68] sm:$0xff] }
  0x17   :  { %121 = vmatpush.msra.mxu0 %v60_v16  ;;  %317 = vmatpush.msra.mxu3 %v60_v16  ;;  %v47_v50 = vld [vmem:[%s563_s0 + $0x50] sm:$0xff]  ;;  %v52_v51 = vld [vmem:[%s563_s0 + $0x78] sm:$0xff]  ;;  %v208_v53 = vld [vmem:[%s566_s3 + $0x28] sm:$0xff] }
  0x18   :  { %167 = vmatpush.msra.mxu1 %v71_v17  ;;  %225 = vmatpush.msra.mxu2 %v216_v38  ;;  %v209_v52 = vld [vmem:[%s566_s3 + $0x30] sm:$0xff]  ;;  %v207_v54 = vld [vmem:[%s566_s3 + $0x20] sm:$0xff]  ;;  %v206_v55 = vld [vmem:[%s566_s3 + $0x18] sm:$0xff] }
  0x19   :  { %122 = vmatpush.msra.mxu0 %v59_v18  ;;  %318 = vmatpush.msra.mxu3 %v59_v18  ;;  %v205_v56 = vld [vmem:[%s566_s3 + $0x10] sm:$0xff]  ;;  %v204_v57 = vld [vmem:[%s566_s3 + $0x8] sm:$0xff]  ;;  %v203_v58 = vld [vmem:[%s566_s3] sm:$0xff] }
  0x1a   :  { %168 = vmatpush.msra.mxu1 %v70_v19  ;;  %226 = vmatpush.msra.mxu2 %v215_v39  ;;  %v345_v60 = vld [vmem:[%s565_s2] ss:$0 sm:$0xff] }
  0x1b   :  { %123 = vmatpush.msra.mxu0 %v58_v20  ;;  %319 = vmatpush.msra.mxu3 %v58_v20 }
  0x1c   :  { %169 = vmatpush.msra.mxu1 %v69_v21  ;;  %227 = vmatpush.msra.mxu2 %v214_v42 }
  0x1d   :  { %124 = vmatpush.msra.mxu0 %v57_v22  ;;  %301 = vmatmul.msk.f32.vlgmr.msra.gmra.mxu1 %vm84_vm1, %v38_v23 }
  0x1e   :  { %320 = vmatpush.msra.mxu3 %v57_v22  ;;  %228 = vmatpush.msra.mxu2 %v213_v43 }
  0x1f   :  { %125 = vmatpush.msra.mxu0 %v56_v24 }
  0x20   :  { %321 = vmatpush.msra.mxu3 %v56_v24  ;;  %229 = vmatpush.msra.mxu2 %v212_v44 }
  0x21   :  { %126 = vmatpush.msra.mxu0 %v55_v25 }
  0x22   :  { %322 = vmatpush.msra.mxu3 %v55_v25  ;;  %230 = vmatpush.msra.mxu2 %v211_v45 }
  0x23   :  { %127 = vmatpush.msra.mxu0 %v54_v26 }
  0x24   :  { %323 = vmatpush.msra.mxu3 %v54_v26  ;;  %231 = vmatpush.msra.mxu2 %v210_v48 }
  0x25   :  { %128 = vmatpush.msra.mxu0 %v53_v27  ;;  %302 = vmatmul.msk.f32.gmra.mxu1 %vm84_vm1, %v40_v28 }
  0x26   :  { %129 = vmatmul.f32.vlgmr.msra.gmra.mxu0 %v37_v29  ;;  %324 = vmatpush.msra.mxu3 %v53_v27 }
  0x27   :  { %147 = vmatmul.f32.vlgmr.msra.gmra.mxu3 %v49_v30  ;;  %232 = vmatpush.msra.mxu2 %v209_v52 }
  0x28   :  { %325 = vmatpush.msrb.mxu3 %v218_v36  ;;  %v346_v36 = vld [vmem:[%s567_s4] ss:$0 sm:$0xff]  ;;  %s402_s4 = smov [#allocation5]  }
  0x29   :  { %233 = vmatpush.msra.mxu2 %v208_v53  ;;  %s285_s16 = sshll.u32 %s402_s4, 4  ;;  %s286_s16 = int_to_ptr.vmem [resolvable:$true] %s285_s16 }
  0x2a   :  { %326 = vmatpush.msrb.mxu3 %v217_v37 }
  0x2b   :  { %234 = vmatpush.msra.mxu2 %v207_v54 }
  0x2c   :  { %327 = vmatpush.msrb.mxu3 %v216_v38 }
  0x2d   :  { %303 = vmatmul.msk.f32.gmra.mxu1 %vm84_vm1, %v42_v31  ;;  %235 = vmatpush.msra.mxu2 %v206_v55 }
  0x2e   :  { %132 = vmatmul.f32.gmra.mxu0 %v39_v32  ;;  %328 = vmatpush.msrb.mxu3 %v215_v39 }
  0x2f   :  { %150 = vmatmul.f32.gmra.mxu3 %v51_v33  ;;  %236 = vmatpush.msra.mxu2 %v205_v56 }
  0x30   :  { %329 = vmatpush.msrb.mxu3 %v214_v42 }
  0x31   :  { %237 = vmatpush.msra.mxu2 %v204_v57 }
  0x32   :  { %330 = vmatpush.msrb.mxu3 %v213_v43 }
  0x33   :  { %238 = vmatpush.msra.mxu2 %v203_v58 }
  0x34   :  { %331 = vmatpush.msrb.mxu3 %v212_v44 }
  0x35   :  { %304 = vmatmul.msk.f32.gmra.mxu1 %vm84_vm1, %v44_v34 }
  0x36   :  { %135 = vmatmul.f32.gmra.mxu0 %v41_v35  ;;  %332 = vmatpush.msrb.mxu3 %v211_v45 }
  0x38   :  { %333 = vmatpush.msrb.mxu3 %v210_v48 }
  0x3a   :  { %334 = vmatpush.msrb.mxu3 %v209_v52 }
  0x3c   :  { %335 = vmatpush.msrb.mxu3 %v208_v53 }
  0x3d   :  { %305 = vmatmul.msk.f32.gmra.mxu1 %vm84_vm1, %v46_v40 }
  0x3e   :  { %138 = vmatmul.f32.gmra.mxu0 %v43_v41  ;;  %336 = vmatpush.msrb.mxu3 %v207_v54 }
  0x40   :  { %337 = vmatpush.msrb.mxu3 %v206_v55 }
  0x42   :  { %338 = vmatpush.msrb.mxu3 %v205_v56 }
  0x44   :  { %339 = vmatpush.msrb.mxu3 %v204_v57 }
  0x45   :  { %306 = vmatmul.msk.f32.gmra.mxu1 %vm84_vm1, %v48_v46 }
  0x46   :  { %141 = vmatmul.f32.gmra.mxu0 %v45_v47  ;;  %340 = vmatpush.msrb.mxu3 %v203_v58 }
  0x4d   :  { %307 = vmatmul.msk.f32.gmra.mxu1 %vm84_vm1, %v50_v49 }
  0x4e   :  { %144 = vmatmul.f32.gmra.mxu0 %v47_v50 }
  0x55   :  { %308 = vmatmul.msk.f32.gmra.mxu1 %vm84_vm1, %v52_v51 }
  0x9a   :  { %v171_v59 = vpop.f32.mrf.mxu1 }
  0xa2   :  { %v174_v61 = vpop.f32.mrf.mxu1 }
  0xa3   :  { %v130_v62 = vpop.f32.mrf.mxu0 }
  0xa4   :  { %v131_v63 = vadd.f32 %v345_v60, %v130_v62 }
  0xa6   :  { %v172_v0 = vadd.f32 %v171_v59, %v131_v63 }
  0xa8   :  { %v195_v1 = vmax.f32 %v172_v0, 0.0 }
  0xaa   :  { %239 = vmatmul.f32.vlgmr.msra.gmra.mxu2 %v195_v1  ;;  %v177_v2 = vpop.f32.mrf.mxu1  ;;  %v148_v18 = vpop.f32.mrf.mxu3 }
  0xab   :  { %v133_v3 = vpop.f32.mrf.mxu0  ;;  %v149_v29 = vadd.f32 %v345_v60, %v148_v18 }
  0xac   :  { %v134_v4 = vadd.f32 %v345_v60, %v133_v3 }
  0xae   :  { %v175_v5 = vadd.f32 %v174_v61, %v134_v4 }
  0xb0   :  { %v196_v6 = vmax.f32 %v175_v5, 0.0 }
  0xb2   :  { %242 = vmatmul.f32.gmra.mxu2 %v196_v6  ;;  %v180_v7 = vpop.f32.mrf.mxu1  ;;  %v151_v26 = vpop.f32.mrf.mxu3 }
  0xb3   :  { %v136_v8 = vpop.f32.mrf.mxu0  ;;  %v152_v28 = vadd.f32 %v345_v60, %v151_v26 }
  0xb4   :  { %v137_v9 = vadd.f32 %v345_v60, %v136_v8 }
  0xb6   :  { %v178_v10 = vadd.f32 %v177_v2, %v137_v9 }
  0xb8   :  { %v197_v11 = vmax.f32 %v178_v10, 0.0 }
  0xba   :  { %245 = vmatmul.f32.gmra.mxu2 %v197_v11  ;;  %v183_v12 = vpop.f32.mrf.mxu1 }
  0xbb   :  { %v139_v13 = vpop.f32.mrf.mxu0 }
  0xbc   :  { %v140_v14 = vadd.f32 %v345_v60, %v139_v13 }
  0xbe   :  { %v181_v15 = vadd.f32 %v180_v7, %v140_v14 }
  0xc0   :  { %v198_v16 = vmax.f32 %v181_v15, 0.0 }
  0xc2   :  { %248 = vmatmul.f32.gmra.mxu2 %v198_v16  ;;  %v186_v17 = vpop.f32.mrf.mxu1 }
  0xc3   :  { %v142_v19 = vpop.f32.mrf.mxu0 }
  0xc4   :  { %v143_v20 = vadd.f32 %v345_v60, %v142_v19 }
  0xc6   :  { %v184_v21 = vadd.f32 %v183_v12, %v143_v20 }
  0xc8   :  { %v199_v22 = vmax.f32 %v184_v21, 0.0 }
  0xca   :  { %251 = vmatmul.f32.gmra.mxu2 %v199_v22  ;;  %v189_v23 = vpop.f32.mrf.mxu1 }
  0xcb   :  { %v145_v24 = vpop.f32.mrf.mxu0  ;;  %v190_v33 = vadd.f32 %v189_v23, %v149_v29 }
  0xcc   :  { %v146_v25 = vadd.f32 %v345_v60, %v145_v24 }
  0xcd   :  { %v201_v35 = vmax.f32 %v190_v33, 0.0 }
  0xce   :  { %v187_v27 = vadd.f32 %v186_v17, %v146_v25 }
  0xd0   :  { %v200_v30 = vmax.f32 %v187_v27, 0.0 }
  0xd2   :  { %254 = vmatmul.f32.gmra.mxu2 %v200_v30  ;;  %v192_v31 = vpop.f32.mrf.mxu1 }
  0xd3   :  { %v193_v32 = vadd.f32 %v192_v31, %v152_v28 }
  0xd5   :  { %v202_v34 = vmax.f32 %v193_v32, 0.0 }
  0xd7   :  { %260 = vmatmul.f32.vlgmr.msrb.gmra.mxu3 %v202_v34 }
  0xda   :  { %257 = vmatmul.f32.gmra.mxu2 %v201_v35 }
 0x12d   :  { %v240_v37 = vpop.f32.mrf.mxu2 }
 0x12e   :  { %v241_v38 = vadd.f32 %v346_v36, %v240_v37 }
 0x130   :  { %v264_v39 = vmax.f32 %v241_v38, 0.0 }
 0x132   :  { %273 = vst.msk [vmem:[#allocation5] sm:$0xff] %vm272_vm2, %v264_v39 }
 0x135   :  { %v243_v40 = vpop.f32.mrf.mxu2 }
 0x136   :  { %v244_v41 = vadd.f32 %v346_v36, %v243_v40 }
 0x138   :  { %v265_v42 = vmax.f32 %v244_v41, 0.0 }
 0x13a   :  { %274 = vst.msk [vmem:[#allocation5 + $0x8] sm:$0xff] %vm272_vm2, %v265_v42 }
 0x13d   :  { %v246_v43 = vpop.f32.mrf.mxu2 }
 0x13e   :  { %v247_v44 = vadd.f32 %v346_v36, %v246_v43 }
 0x140   :  { %v266_v45 = vmax.f32 %v247_v44, 0.0 }
 0x142   :  { %275 = vst.msk [vmem:[#allocation5 + $0x10] sm:$0xff] %vm272_vm2, %v266_v45 }
 0x145   :  { %v249_v46 = vpop.f32.mrf.mxu2 }
 0x146   :  { %v250_v47 = vadd.f32 %v346_v36, %v249_v46 }
 0x148   :  { %v267_v48 = vmax.f32 %v250_v47, 0.0 }
 0x14a   :  { %276 = vst.msk [vmem:[#allocation5 + $0x18] sm:$0xff] %vm272_vm2, %v267_v48 }
 0x14d   :  { %v252_v49 = vpop.f32.mrf.mxu2 }
 0x14e   :  { %v253_v50 = vadd.f32 %v346_v36, %v252_v49 }
 0x150   :  { %v268_v51 = vmax.f32 %v253_v50, 0.0 }
 0x152   :  { %277 = vst.msk [vmem:[#allocation5 + $0x20] sm:$0xff] %vm272_vm2, %v268_v51 }
 0x155   :  { %v255_v52 = vpop.f32.mrf.mxu2 }
 0x156   :  { %v256_v53 = vadd.f32 %v346_v36, %v255_v52 }
 0x158   :  { %v269_v54 = vmax.f32 %v256_v53, 0.0 }
 0x15a   :  { %278 = vst.msk [vmem:[#allocation5 + $0x28] sm:$0xff] %vm272_vm2, %v269_v54  ;;  %v261_v55 = vpop.f32.mrf.mxu3 }
 0x15b   :  { %v262_v56 = vadd.f32 %v346_v36, %v261_v55 }
 0x15d   :  { %v258_v57 = vpop.f32.mrf.mxu2  ;;  %v271_v58 = vmax.f32 %v262_v56, 0.0 }
 0x15e   :  { %v259_v59 = vadd.f32 %v346_v36, %v258_v57 }
 0x15f   :  { %280 = vst.msk [vmem:[#allocation5 + $0x38] sm:$0xff] %vm272_vm2, %v271_v58 }
 0x160   :  { %v270_v60 = vmax.f32 %v259_v59, 0.0 }
 0x162   :  { %279 = vst.msk [vmem:[#allocation5 + $0x30] sm:$0xff] %vm272_vm2, %v270_v60 }
 0x163   :  { %293 = dma.vmem_to_hbm [thread:$0]  %s286_s16, 1024, %s288_s19, [#allocation4], %s400_s23, %s400_s23, %s401_s24  }
 0x164   :  { %397 = dma.done.wait [#allocation4], 1024  }
 0x165   :  { %398 = vsyncadd [#allocation4], 4294966272 }
 0x166   :  { %298 = vsyncpa [#allocation3], 1 }
 0x167   :  { %299 = vsyncpa [#allocation4], 1 }

</bundles_post_ra>
